<compile_context>
chip_gen: v6e
topology: v6e:2x2x1
jax: 0.10.0
libtpu: 0.0.40
codegen_flags: <defaults>
</compile_context>

<pallas_src>
import functools

import jax
import jax.numpy as jnp
from jax.experimental import pallas as pl
from jax.experimental.pallas import tpu as pltpu


def _round_up(x, m):
    return (x + m - 1) // m * m


def _group_conv_kernel(x_ref, w_ref, o_ref, *, tap_offsets, batch_block, lo_pad):
    # x_ref: (1, B, Cin_p, Lx_pad)    zero-padded, flattened input plane
    # w_ref: (1, Cout, KH*KW*Cin_p)   per-group weights, tap-major / cin-minor
    # o_ref: (1, B, Cout, Lo_pad)     flattened output plane (lane-dense)
    w = w_ref[0]                                            # (Cout, K)
    for b in range(batch_block):
        xb = x_ref[0, b]                                    # (Cin_p, Lx_pad)
        # im2col operand: one shifted (Cin_p, Lo_pad) view per tap, stacked on
        # the sublane axis -> one big-contraction MXU matmul instead of KH*KW
        # tiny-K matmuls + VALU accumulates.
        x_cat = jnp.concatenate(
            [xb[:, off:off + lo_pad] for off in tap_offsets], axis=0)
        o_ref[0, b] = jnp.dot(
            w, x_cat, preferred_element_type=jnp.float32).astype(o_ref.dtype)


def _pick_batch_block(n, cin_p, cout, lx_pad, lo_pad, k, itemsize):
    """Largest divisor of n (<=8) whose double-buffered footprint fits VMEM budget."""
    budget = 16 * 1024 * 1024
    best = 1
    for b in range(1, min(n, 8) + 1):
        if n % b:
            continue
        est = (2 * b * (cin_p * lx_pad + cout * lo_pad) + 2 * cout * k) * itemsize
        if est <= budget:
            best = b
    return best


def group_conv_forward(data, weight, bias, *, stride=1, padding=0,
                       compute_dtype=None):
    """data: (N, Cin, H, Wtot) NCHW with Wtot % 3 == 0.
    weight: (3*Cout, Cin, KH, KW), bias: (3*Cout,).
    compute_dtype: optional MXU operand dtype (e.g. jnp.bfloat16 on v6e/v7x)."""
    assert stride == 1  # TODO(synk): stride > 1 not implemented in the Pallas kernel.
    N, Cin, H, Wtot = data.shape
    assert Wtot % 3 == 0
    W3 = Wtot // 3
    three_cout, cin_w, KH, KW = weight.shape
    assert cin_w == Cin and three_cout % 3 == 0
    Cout = three_cout // 3

    Hp, Wp = H + 2 * padding, W3 + 2 * padding
    Hout = Hp - KH + 1
    Wout = Wp - KW + 1

    Cin_p = _round_up(Cin, 8)                 # sublane-aligned concat pieces
    Lo = Hout * Wp                            # valid flat output length
    Lo_pad = _round_up(Lo, 128)               # lane-dense output block
    Lx = Lo_pad + (KH - 1) * Wp + (KW - 1)    # max tap offset still in-bounds
    Lx_pad = _round_up(Lx, 128)               # lane-dense input block
    K = KH * KW * Cin_p

    cdt = compute_dtype if compute_dtype is not None else data.dtype
    itemsize = jnp.dtype(cdt).itemsize
    B = _pick_batch_block(N, Cin_p, Cout, Lx_pad, Lo_pad, K, itemsize)

    # --- glue (one fused XLA pass under jit): regroup width-thirds onto a
    # leading group axis, zero-pad spatially, flatten the plane onto lanes.
    xg = data.astype(cdt)
    if Cin_p != Cin:
        xg = jnp.pad(xg, ((0, 0), (0, Cin_p - Cin), (0, 0), (0, 0)))
    xg = xg.reshape(N, Cin_p, H, 3, W3).transpose(3, 0, 1, 2, 4)    # (3,N,Cp,H,W3)
    xg = jnp.pad(xg, ((0, 0), (0, 0), (0, 0),
                      (padding, padding), (padding, padding)))       # (3,N,Cp,Hp,Wp)
    xg = xg.reshape(3, N, Cin_p, Hp * Wp)
    xg = jnp.pad(xg, ((0, 0), (0, 0), (0, 0), (0, Lx_pad - Hp * Wp)))

    wg = weight.astype(cdt).reshape(3, Cout, Cin, KH, KW)
    if Cin_p != Cin:
        wg = jnp.pad(wg, ((0, 0), (0, 0), (0, Cin_p - Cin), (0, 0), (0, 0)))
    wg = wg.transpose(0, 1, 3, 4, 2).reshape(3, Cout, K)             # (kh,kw,cin)-major

    tap_offsets = tuple(kh * Wp + kw for kh in range(KH) for kw in range(KW))
    kernel = functools.partial(_group_conv_kernel, tap_offsets=tap_offsets,
                               batch_block=B, lo_pad=Lo_pad)

    out_flat = pl.pallas_call(
        kernel,
        out_shape=jax.ShapeDtypeStruct((3, N, Cout, Lo_pad), data.dtype),
        grid_spec=pltpu.PrefetchScalarGridSpec(
            num_scalar_prefetch=0,
            grid=(3, N // B),               # weight tile reused across the n axis
            in_specs=[
                pl.BlockSpec((1, B, Cin_p, Lx_pad), lambda g, n: (g, n, 0, 0)),
                pl.BlockSpec((1, Cout, K), lambda g, n: (g, 0, 0)),
            ],
            out_specs=pl.BlockSpec((1, B, Cout, Lo_pad), lambda g, n: (g, n, 0, 0)),
        ),
        compiler_params=pltpu.CompilerParams(
            dimension_semantics=("parallel", "parallel"),
            vmem_limit_bytes=48 * 1024 * 1024),
    )(xg, wg)

    # --- epilogue (one fused XLA pass): bias add, drop wrap/pad columns,
    # interleave the channel-groups back onto the width axis.
    out = out_flat + bias.reshape(3, 1, Cout, 1).astype(out_flat.dtype)
    out = out[..., :Lo].reshape(3, N, Cout, Hout, Wp)[..., :Wout]    # (3,N,Cout,Ho,Wo)
    out = out.transpose(1, 2, 3, 0, 4).reshape(N, Cout, Hout, 3 * Wout)
    return out


def _reference(data, weight, bias, *, padding):
    """Pure-JAX reference mirroring the PyTorch module."""
    N, Cin, H, Wtot = data.shape
    W3 = Wtot // 3
    dc = jnp.concatenate([data[..., g * W3:(g + 1) * W3] for g in range(3)], axis=1)
    y = jax.lax.conv_general_dilated(
        dc, weight, window_strides=(1, 1),
        padding=[(padding, padding), (padding, padding)],
        dimension_numbers=("NCHW", "OIHW", "NCHW"),
        feature_group_count=3)
    y = y + bias[None, :, None, None]
    return jnp.concatenate(jnp.split(y, 3, axis=1), axis=-1)


if __name__ == "__main__":
    key = jax.random.PRNGKey(0)
    k1, k2, k3 = jax.random.split(key, 3)

    # small shapes consistent with the module: NCHW, width divisible by 3
    N, Cin, Cout, H, Wtot = 2, 4, 4, 16, 24
    KH = KW = 3
    padding = 1

    data = jax.random.normal(k1, (N, Cin, H, Wtot), dtype=jnp.float32)
    weight = 0.1 * jax.random.normal(k2, (3 * Cout, Cin, KH, KW), dtype=jnp.float32)
    bias = 0.1 * jax.random.normal(k3, (3 * Cout,), dtype=jnp.float32)

    # jit the wrapper so the regroup/pad glue fuses into single HBM passes.
    fwd = jax.jit(functools.partial(group_conv_forward, stride=1, padding=padding))
    out = jax.block_until_ready(fwd(data, weight, bias))

    ref = _reference(data, weight, bias, padding=padding)
    assert out.shape == (N, Cout, H, Wtot), out.shape
    err = float(jnp.max(jnp.abs(out - ref)))
    assert jnp.allclose(out, ref, atol=1e-4, rtol=1e-4), err

    print("KERNEL_OK")
</pallas_src>

<mosaic_0001>
module attributes {stable_mosaic.version = 11 : i64} {
  func.func @_group_conv_kernel(%arg0: i32, %arg1: i32, %arg2: memref<1x2x8x384xf32, #tpu.memory_space<vmem>>, %arg3: memref<1x4x72xf32, #tpu.memory_space<vmem>>, %arg4: memref<1x2x4x256xf32, #tpu.memory_space<vmem>>) attributes {dimension_semantics = [#tpu.dimension_semantics<parallel>, #tpu.dimension_semantics<parallel>], iteration_bounds = array<i64: 3, 1>, scalar_prefetch = 0 : i64, scratch_operands = 0 : i64, tpu.core_type = #tpu.core_type<tc>, window_params = [{transform_indices = @transform_0, window_bounds = array<i64: 1, 2, 8, 384>}, {transform_indices = @transform_1, window_bounds = array<i64: 1, 4, 72>}, {transform_indices = @transform_2, window_bounds = array<i64: 1, 2, 4, 256>}]} {
    %c0 = arith.constant 0 : index
    %c0_0 = arith.constant 0 : index
    %c0_1 = arith.constant 0 : index
    %0 = vector.load %arg3[%c0, %c0_0, %c0_1] : memref<1x4x72xf32, #tpu.memory_space<vmem>>, vector<1x4x72xf32>
    %1 = vector.shape_cast %0 : vector<1x4x72xf32> to vector<4x72xf32>
    %c0_2 = arith.constant 0 : index
    %c0_3 = arith.constant 0 : index
    %c0_4 = arith.constant 0 : index
    %c0_5 = arith.constant 0 : index
    %2 = vector.load %arg2[%c0_2, %c0_3, %c0_4, %c0_5] : memref<1x2x8x384xf32, #tpu.memory_space<vmem>>, vector<1x1x8x384xf32>
    %3 = vector.shape_cast %2 : vector<1x1x8x384xf32> to vector<8x384xf32>
    %4 = vector.extract_strided_slice %3 {offsets = [0, 0], sizes = [8, 256], strides = [1, 1]} : vector<8x384xf32> to vector<8x256xf32>
    %5 = vector.extract_strided_slice %3 {offsets = [0, 1], sizes = [8, 256], strides = [1, 1]} : vector<8x384xf32> to vector<8x256xf32>
    %6 = vector.extract_strided_slice %3 {offsets = [0, 2], sizes = [8, 256], strides = [1, 1]} : vector<8x384xf32> to vector<8x256xf32>
    %7 = vector.extract_strided_slice %3 {offsets = [0, 10], sizes = [8, 256], strides = [1, 1]} : vector<8x384xf32> to vector<8x256xf32>
    %8 = vector.extract_strided_slice %3 {offsets = [0, 11], sizes = [8, 256], strides = [1, 1]} : vector<8x384xf32> to vector<8x256xf32>
    %9 = vector.extract_strided_slice %3 {offsets = [0, 12], sizes = [8, 256], strides = [1, 1]} : vector<8x384xf32> to vector<8x256xf32>
    %10 = vector.extract_strided_slice %3 {offsets = [0, 20], sizes = [8, 256], strides = [1, 1]} : vector<8x384xf32> to vector<8x256xf32>
    %11 = vector.extract_strided_slice %3 {offsets = [0, 21], sizes = [8, 256], strides = [1, 1]} : vector<8x384xf32> to vector<8x256xf32>
    %12 = vector.extract_strided_slice %3 {offsets = [0, 22], sizes = [8, 256], strides = [1, 1]} : vector<8x384xf32> to vector<8x256xf32>
    %13 = tpu.concatenate %4, %5, %6, %7, %8, %9, %10, %11, %12 in 0 : vector<8x256xf32>, vector<8x256xf32>, vector<8x256xf32>, vector<8x256xf32>, vector<8x256xf32>, vector<8x256xf32>, vector<8x256xf32>, vector<8x256xf32>, vector<8x256xf32> -> vector<72x256xf32>
    %cst = arith.constant dense<0.000000e+00> : vector<4x256xf32>
    %14 = tpu.matmul %1, %13, %cst {dimension_numbers = #tpu.dot_dimension_numbers<[1], [0], [0], [1], [0, 0, 1, 1], [], []>} : vector<4x72xf32>, vector<72x256xf32>, vector<4x256xf32> -> vector<4x256xf32>
    %c0_6 = arith.constant 0 : index
    %c0_7 = arith.constant 0 : index
    %c0_8 = arith.constant 0 : index
    %c0_9 = arith.constant 0 : index
    %15 = vector.load %arg4[%c0_6, %c0_7, %c0_8, %c0_9] : memref<1x2x4x256xf32, #tpu.memory_space<vmem>>, vector<1x1x4x256xf32>
    %16 = vector.shape_cast %15 : vector<1x1x4x256xf32> to vector<4x256xf32>
    %17 = vector.shape_cast %14 : vector<4x256xf32> to vector<1x1x4x256xf32>
    tpu.vector_store %arg4[%c0_6, %c0_7, %c0_8, %c0_9], %17 {strides = array<i32>} : memref<1x2x4x256xf32, #tpu.memory_space<vmem>>, vector<1x1x4x256xf32>,
    %c0_10 = arith.constant 0 : index
    %c1 = arith.constant 1 : index
    %c0_11 = arith.constant 0 : index
    %c0_12 = arith.constant 0 : index
    %18 = vector.load %arg2[%c0_10, %c1, %c0_11, %c0_12] : memref<1x2x8x384xf32, #tpu.memory_space<vmem>>, vector<1x1x8x384xf32>
    %19 = vector.shape_cast %18 : vector<1x1x8x384xf32> to vector<8x384xf32>
    %20 = vector.extract_strided_slice %19 {offsets = [0, 0], sizes = [8, 256], strides = [1, 1]} : vector<8x384xf32> to vector<8x256xf32>
    %21 = vector.extract_strided_slice %19 {offsets = [0, 1], sizes = [8, 256], strides = [1, 1]} : vector<8x384xf32> to vector<8x256xf32>
    %22 = vector.extract_strided_slice %19 {offsets = [0, 2], sizes = [8, 256], strides = [1, 1]} : vector<8x384xf32> to vector<8x256xf32>
    %23 = vector.extract_strided_slice %19 {offsets = [0, 10], sizes = [8, 256], strides = [1, 1]} : vector<8x384xf32> to vector<8x256xf32>
    %24 = vector.extract_strided_slice %19 {offsets = [0, 11], sizes = [8, 256], strides = [1, 1]} : vector<8x384xf32> to vector<8x256xf32>
    %25 = vector.extract_strided_slice %19 {offsets = [0, 12], sizes = [8, 256], strides = [1, 1]} : vector<8x384xf32> to vector<8x256xf32>
    %26 = vector.extract_strided_slice %19 {offsets = [0, 20], sizes = [8, 256], strides = [1, 1]} : vector<8x384xf32> to vector<8x256xf32>
    %27 = vector.extract_strided_slice %19 {offsets = [0, 21], sizes = [8, 256], strides = [1, 1]} : vector<8x384xf32> to vector<8x256xf32>
    %28 = vector.extract_strided_slice %19 {offsets = [0, 22], sizes = [8, 256], strides = [1, 1]} : vector<8x384xf32> to vector<8x256xf32>
    %29 = tpu.concatenate %20, %21, %22, %23, %24, %25, %26, %27, %28 in 0 : vector<8x256xf32>, vector<8x256xf32>, vector<8x256xf32>, vector<8x256xf32>, vector<8x256xf32>, vector<8x256xf32>, vector<8x256xf32>, vector<8x256xf32>, vector<8x256xf32> -> vector<72x256xf32>
    %cst_13 = arith.constant dense<0.000000e+00> : vector<4x256xf32>
    %30 = tpu.matmul %1, %29, %cst_13 {dimension_numbers = #tpu.dot_dimension_numbers<[1], [0], [0], [1], [0, 0, 1, 1], [], []>} : vector<4x72xf32>, vector<72x256xf32>, vector<4x256xf32> -> vector<4x256xf32>
    %c0_14 = arith.constant 0 : index
    %c1_15 = arith.constant 1 : index
    %c0_16 = arith.constant 0 : index
    %c0_17 = arith.constant 0 : index
    %31 = vector.load %arg4[%c0_14, %c1_15, %c0_16, %c0_17] : memref<1x2x4x256xf32, #tpu.memory_space<vmem>>, vector<1x1x4x256xf32>
    %32 = vector.shape_cast %31 : vector<1x1x4x256xf32> to vector<4x256xf32>
    %33 = vector.shape_cast %30 : vector<4x256xf32> to vector<1x1x4x256xf32>
    tpu.vector_store %arg4[%c0_14, %c1_15, %c0_16, %c0_17], %33 {strides = array<i32>} : memref<1x2x4x256xf32, #tpu.memory_space<vmem>>, vector<1x1x4x256xf32>,
    return
  }
  func.func @transform_0(%arg0: i32, %arg1: i32) -> (i32, i32, i32, i32) {
    %c0_i32 = arith.constant 0 : i32
    %c0_i32_0 = arith.constant 0 : i32
    %c0_i32_1 = arith.constant 0 : i32
    return %arg0, %arg1, %c0_i32, %c0_i32_0 : i32, i32, i32, i32
  }
  func.func @transform_1(%arg0: i32, %arg1: i32) -> (i32, i32, i32) {
    %c0_i32 = arith.constant 0 : i32
    %c0_i32_0 = arith.constant 0 : i32
    %c0_i32_1 = arith.constant 0 : i32
    return %arg0, %c0_i32, %c0_i32_0 : i32, i32, i32
  }
  func.func @transform_2(%arg0: i32, %arg1: i32) -> (i32, i32, i32, i32) {
    %c0_i32 = arith.constant 0 : i32
    %c0_i32_0 = arith.constant 0 : i32
    %c0_i32_1 = arith.constant 0 : i32
    return %arg0, %arg1, %c0_i32, %c0_i32_0 : i32, i32, i32, i32
  }
}

</mosaic_0001>

<bundles_post_ra>
// kernel: group_conv_forward.1
= control target key start
LH: loop header
LB: loop body
LE: loop exit
PB: predicated region body
PF: predicated region fallthrough
CT: control target
= control target key end

     0   :  { %s752_s9 = smov 0   ;;  %s754_s10 = smov 0   ;;  %s837_s0 = inlined_call_operand.vmem [shape: f32[3,2,8,384], index: 0, kind: input, shape index: {}]   ;;  %s838_s1 = inlined_call_operand.vmem [shape: f32[3,4,72], index: 1, kind: input, shape index: {}]   ;;  %s839_s2 = inlined_call_operand.vmem [shape: f32[3,2,4,256], index: 2, kind: output, shape index: {}]  }
   0x1   :  { %s756_s11 = smov 0  }
   0x2 LB: > { %s24_s12 = sadd.s32 1, %s722_s10  ;;  %p656_p0 = scmp.ge.s32.totalorder %s726_s11, 1  ;;  %s726_s11 = sphi %s756_s11, %s12_s11   ;;  %s722_s10 = sphi %s754_s10, %s841_s10   ;;  %s718_s9 = sphi %s752_s9, %s840_s9  }
   0x3   : > { %p26_p1 = scmp.ge.s32.totalorder %s24_s12, 3  ;;  %p143_p2 = scmp.lt.s32.totalorder %s726_s11, 4 }
   0x5   : > { %s843_s12 = smov (%p26_p1, %s24_s12), 0  ;;  %p144_p3 = pnand %p656_p0, %p143_p2 }
   0x6   : > { %p180_p4 = scmp.lt.s32.totalorder (!%p144_p3), %s718_s9, 2  ;;  %s728_s17 = smov (!%p144_p3), 106  }
   0x7   : > { %147 = sbr.rel (%p144_p3) target bundleno = 426 (0x1aa), region = 28  ;;  %s729_s18 = smov (!%p144_p3), 107  }
   0x8   : > { %s730_s19 = smov (!%p144_p3), 108   ;;  %s731_s20 = smov (!%p144_p3), 116  }
   0x9   : > { %s732_s21 = smov (!%p144_p3), 117   ;;  %s733_s22 = smov (!%p144_p3), 118  }
   0xa   : > { %s734_s23 = smov (!%p144_p3), 126   ;;  %s736_s24 = smov (!%p144_p3), 127  }
   0xc   : > { %s845_s9 = smov (!%p180_p4, %s718_s9), 2  ;;  %v735_v6 = vmov 0.0   ;;  %vm295_vm0 = vcmask 867328   ;;  %vm284_vm1 = vcmask 875520   ;;  %vm273_vm2 = vcmask 883712  }
   0xd   : > { %s670_s13 = smul.u32 48, %s845_s9  ;;  %368 = vmatprep.mubr.f32.mxu0 %v735_v6  ;;  %531 = vmatprep.mubr.f32.mxu1 %v735_v6  ;;  %vm262_vm3 = vcmask 949248   ;;  %vm251_vm4 = vcmask 957440   ;;  %vm240_vm5 = vcmask 965632   ;;  %vm229_vm6 = vcmask 1031168   ;;  %s658_s25 = sshll.u32 %s845_s9, 2 }
   0xe   : > { %vm218_vm7 = vcmask 1039360   ;;  %s193_s28 = scalar_lea.vmem %s838_s1, %s658_s25  ;;  %vm300_vm8 = vcmask 588800   ;;  %s669_s29 = sshll.u32 %s845_s9, 4 }
   0xf   : > { %s188_s16 = scalar_lea.vmem %s837_s0, %s670_s13  ;;  %s203_s4 = scalar_lea.vmem %s839_s2, %s669_s29 }
  0x10   : > { %v776_v0 = vld [vmem:[%s188_s16 + $0x20] sm:$0xff]  ;;  %v778_v1 = vld [vmem:[%s188_s16 + $0x8] sm:$0xff]  ;;  %v208_v3 = vld [vmem:[%s188_s16 + $0x10] sm:$0xff] }
  0x11   : > { %459 = vrot.lane.b32.xlu1 %v776_v0, %s728_s17  ;;  %291 = vrot.lane.b32.xlu0 %v778_v1, %s728_s17  ;;  %v664_v2 = vld [vmem:[%s188_s16 + $0x28] sm:$0xff]  ;;  %v782_v4 = vld [vmem:[%s188_s16 + $0x18] sm:$0xff] }
  0x12   : > { %v784_v5 = vld [vmem:[%s188_s16] sm:$0xff] }
  0x15   : > { %461 = vrot.lane.b32.xlu1 %v664_v2, %s728_s17  ;;  %293 = vrot.lane.b32.xlu0 %v208_v3, %s728_s17 }
  0x19   : > { %457 = vrot.lane.b32.xlu1 %v782_v4, %s728_s17  ;;  %289 = vrot.lane.b32.xlu0 %v784_v5, %s728_s17 }
  0x1d   : > { %282 = vrot.lane.b32.xlu1 %v208_v3, %s729_s18  ;;  %280 = vrot.lane.b32.xlu0 %v778_v1, %s729_s18 }
  0x21   : > { %451 = vrot.lane.b32.xlu1 %v664_v2, %s729_s18  ;;  %449 = vrot.lane.b32.xlu0 %v776_v0, %s729_s18 }
  0x25   : > { %447 = vrot.lane.b32.xlu1 %v782_v4, %s729_s18  ;;  %278 = vrot.lane.b32.xlu0 %v784_v5, %s729_s18 }
  0x29   : > { %271 = vrot.lane.b32.xlu1 %v208_v3, %s730_s19  ;;  %269 = vrot.lane.b32.xlu0 %v778_v1, %s730_s19 }
  0x2d   : > { %441 = vrot.lane.b32.xlu1 %v664_v2, %s730_s19  ;;  %439 = vrot.lane.b32.xlu0 %v776_v0, %s730_s19 }
  0x31   : > { %437 = vrot.lane.b32.xlu1 %v782_v4, %s730_s19  ;;  %267 = vrot.lane.b32.xlu0 %v784_v5, %s730_s19 }
  0x35   : > { %260 = vrot.lane.b32.xlu1 %v208_v3, %s731_s20  ;;  %258 = vrot.lane.b32.xlu0 %v778_v1, %s731_s20 }
  0x39   : > { %431 = vrot.lane.b32.xlu1 %v664_v2, %s731_s20  ;;  %429 = vrot.lane.b32.xlu0 %v776_v0, %s731_s20 }
  0x3d   : > { %427 = vrot.lane.b32.xlu1 %v782_v4, %s731_s20  ;;  %256 = vrot.lane.b32.xlu0 %v784_v5, %s731_s20 }
  0x41   : > { %249 = vrot.lane.b32.xlu1 %v208_v3, %s732_s21  ;;  %247 = vrot.lane.b32.xlu0 %v778_v1, %s732_s21 }
  0x45   : > { %421 = vrot.lane.b32.xlu1 %v664_v2, %s732_s21  ;;  %419 = vrot.lane.b32.xlu0 %v776_v0, %s732_s21 }
  0x49   : > { %417 = vrot.lane.b32.xlu1 %v782_v4, %s732_s21  ;;  %245 = vrot.lane.b32.xlu0 %v784_v5, %s732_s21 }
  0x4d   : > { %238 = vrot.lane.b32.xlu1 %v208_v3, %s733_s22  ;;  %236 = vrot.lane.b32.xlu0 %v778_v1, %s733_s22 }
  0x51   : > { %411 = vrot.lane.b32.xlu1 %v664_v2, %s733_s22  ;;  %409 = vrot.lane.b32.xlu0 %v776_v0, %s733_s22 }
  0x55   : > { %407 = vrot.lane.b32.xlu1 %v782_v4, %s733_s22  ;;  %234 = vrot.lane.b32.xlu0 %v784_v5, %s733_s22 }
  0x59   : > { %227 = vrot.lane.b32.xlu1 %v208_v3, %s734_s23  ;;  %225 = vrot.lane.b32.xlu0 %v778_v1, %s734_s23 }
  0x5d   : > { %401 = vrot.lane.b32.xlu1 %v664_v2, %s734_s23  ;;  %399 = vrot.lane.b32.xlu0 %v776_v0, %s734_s23 }
  0x61   : > { %397 = vrot.lane.b32.xlu1 %v782_v4, %s734_s23  ;;  %223 = vrot.lane.b32.xlu0 %v784_v5, %s734_s23 }
  0x65   : > { %216 = vrot.lane.b32.xlu1 %v208_v3, %s736_s24  ;;  %214 = vrot.lane.b32.xlu0 %v778_v1, %s736_s24 }
  0x69   : > { %391 = vrot.lane.b32.xlu1 %v664_v2, %s736_s24  ;;  %389 = vrot.lane.b32.xlu0 %v776_v0, %s736_s24 }
  0x6d   : > { %387 = vrot.lane.b32.xlu1 %v782_v4, %s736_s24  ;;  %212 = vrot.lane.b32.xlu0 %v784_v5, %s736_s24 }
  0x83   : > { %v460_v7 = vpop.permute.xlu1 %459  ;;  %v292_v8 = vpop.permute.xlu0 %291 }
  0x87   : > { %v462_v9 = vpop.permute.xlu1 %461  ;;  %v294_v10 = vpop.permute.xlu0 %293 }
  0x88   : > { %v297_v11 = vsel %vm295_vm0, %v292_v8, %v294_v10  ;;  %v464_v12 = vsel %vm295_vm0, %v460_v7, %v462_v9 }
  0x89   : > { %318 = vmatprep.subr.mxu0 %v297_v11  ;;  %481 = vmatprep.subr.mxu1 %v464_v12 }
  0x8b   : > { %v458_v13 = vpop.permute.xlu1 %457  ;;  %v290_v14 = vpop.permute.xlu0 %289 }
  0x8c   : > { %v296_v15 = vsel %vm295_vm0, %v290_v14, %v292_v8  ;;  %v463_v16 = vsel %vm295_vm0, %v458_v13, %v460_v7 }
  0x8d   : > { %319 = vmatpush1.msra.mxu0 %v296_v15  ;;  %482 = vmatpush1.msra.mxu1 %v463_v16 }
  0x8f   : > { %v283_v17 = vpop.permute.xlu1 %282  ;;  %v281_v18 = vpop.permute.xlu0 %280 }
  0x90   : > { %v286_v19 = vsel %vm284_vm1, %v281_v18, %v283_v17 }
  0x91   : > { %320 = vmatprep.subr.mxu0 %v286_v19 }
  0x93   : > { %v452_v20 = vpop.permute.xlu1 %451  ;;  %v450_v21 = vpop.permute.xlu0 %449 }
  0x94   : > { %v454_v22 = vsel %vm284_vm1, %v450_v21, %v452_v20 }
  0x95   : > { %483 = vmatprep.subr.mxu1 %v454_v22 }
  0x97   : > { %v448_v23 = vpop.permute.xlu1 %447  ;;  %v279_v24 = vpop.permute.xlu0 %278 }
  0x98   : > { %v285_v25 = vsel %vm284_vm1, %v279_v24, %v281_v18  ;;  %v453_v26 = vsel %vm284_vm1, %v448_v23, %v450_v21 }
  0x99   : > { %321 = vmatpush1.msra.mxu0 %v285_v25  ;;  %484 = vmatpush1.msra.mxu1 %v453_v26 }
  0x9b   : > { %v272_v27 = vpop.permute.xlu1 %271  ;;  %v270_v28 = vpop.permute.xlu0 %269 }
  0x9c   : > { %v275_v29 = vsel %vm273_vm2, %v270_v28, %v272_v27  ;;  %v205_v27 = vld [vmem:[%s193_s28] sm:$0xf] }
  0x9d   : > { %322 = vmatprep.subr.mxu0 %v275_v29 }
  0x9f   : > { %v442_v30 = vpop.permute.xlu1 %441  ;;  %v440_v31 = vpop.permute.xlu0 %439 }
  0xa0   : > { %v444_v32 = vsel %vm273_vm2, %v440_v31, %v442_v30 }
  0xa1   : > { %485 = vmatprep.subr.mxu1 %v444_v32 }
  0xa3   : > { %v438_v33 = vpop.permute.xlu1 %437  ;;  %v268_v34 = vpop.permute.xlu0 %267 }
  0xa4   : > { %v274_v35 = vsel %vm273_vm2, %v268_v34, %v270_v28  ;;  %v443_v36 = vsel %vm273_vm2, %v438_v33, %v440_v31 }
  0xa5   : > { %323 = vmatpush1.msra.mxu0 %v274_v35  ;;  %486 = vmatpush1.msra.mxu1 %v443_v36 }
  0xa7   : > { %v261_v37 = vpop.permute.xlu1 %260  ;;  %v259_v38 = vpop.permute.xlu0 %258 }
  0xa8   : > { %v264_v39 = vsel %vm262_vm3, %v259_v38, %v261_v37 }
  0xa9   : > { %324 = vmatprep.subr.mxu0 %v264_v39 }
  0xab   : > { %v432_v40 = vpop.permute.xlu1 %431  ;;  %v430_v41 = vpop.permute.xlu0 %429 }
  0xac   : > { %v434_v42 = vsel %vm262_vm3, %v430_v41, %v432_v40 }
  0xad   : > { %487 = vmatprep.subr.mxu1 %v434_v42 }
  0xaf   : > { %v428_v43 = vpop.permute.xlu1 %427  ;;  %v257_v44 = vpop.permute.xlu0 %256 }
  0xb0   : > { %v263_v45 = vsel %vm262_vm3, %v257_v44, %v259_v38  ;;  %v433_v46 = vsel %vm262_vm3, %v428_v43, %v430_v41 }
  0xb1   : > { %325 = vmatpush1.msra.mxu0 %v263_v45  ;;  %488 = vmatpush1.msra.mxu1 %v433_v46 }
  0xb3   : > { %v250_v47 = vpop.permute.xlu1 %249  ;;  %v248_v48 = vpop.permute.xlu0 %247 }
  0xb4   : > { %v253_v49 = vsel %vm251_vm4, %v248_v48, %v250_v47 }
  0xb5   : > { %326 = vmatprep.subr.mxu0 %v253_v49 }
  0xb7   : > { %v422_v50 = vpop.permute.xlu1 %421  ;;  %v420_v51 = vpop.permute.xlu0 %419 }
  0xb8   : > { %v424_v52 = vsel %vm251_vm4, %v420_v51, %v422_v50 }
  0xb9   : > { %489 = vmatprep.subr.mxu1 %v424_v52 }
  0xbb   : > { %v418_v53 = vpop.permute.xlu1 %417  ;;  %v246_v54 = vpop.permute.xlu0 %245 }
  0xbc   : > { %v252_v55 = vsel %vm251_vm4, %v246_v54, %v248_v48  ;;  %v423_v56 = vsel %vm251_vm4, %v418_v53, %v420_v51 }
  0xbd   : > { %327 = vmatpush1.msra.mxu0 %v252_v55  ;;  %490 = vmatpush1.msra.mxu1 %v423_v56 }
  0xbf   : > { %v239_v57 = vpop.permute.xlu1 %238  ;;  %v237_v58 = vpop.permute.xlu0 %236 }
  0xc0   : > { %v242_v59 = vsel %vm240_vm5, %v237_v58, %v239_v57 }
  0xc1   : > { %328 = vmatprep.subr.mxu0 %v242_v59 }
  0xc3   : > { %v412_v60 = vpop.permute.xlu1 %411  ;;  %v410_v61 = vpop.permute.xlu0 %409 }
  0xc4   : > { %v414_v62 = vsel %vm240_vm5, %v410_v61, %v412_v60 }
  0xc5   : > { %491 = vmatprep.subr.mxu1 %v414_v62 }
  0xc7   : > { %v408_v63 = vpop.permute.xlu1 %407  ;;  %v235_v2 = vpop.permute.xlu0 %234 }
  0xc8   : > { %v241_v3 = vsel %vm240_vm5, %v235_v2, %v237_v58  ;;  %v413_v6 = vsel %vm240_vm5, %v408_v63, %v410_v61 }
  0xc9   : > { %329 = vmatpush1.msra.mxu0 %v241_v3  ;;  %492 = vmatpush1.msra.mxu1 %v413_v6 }
  0xcb   : > { %v228_v7 = vpop.permute.xlu1 %227  ;;  %v226_v8 = vpop.permute.xlu0 %225 }
  0xcc   : > { %v231_v9 = vsel %vm229_vm6, %v226_v8, %v228_v7 }
  0xcd   : > { %330 = vmatprep.subr.mxu0 %v231_v9 }
  0xcf   : > { %v402_v10 = vpop.permute.xlu1 %401  ;;  %v400_v11 = vpop.permute.xlu0 %399 }
  0xd0   : > { %v404_v12 = vsel %vm229_vm6, %v400_v11, %v402_v10 }
  0xd1   : > { %493 = vmatprep.subr.mxu1 %v404_v12 }
  0xd3   : > { %v398_v13 = vpop.permute.xlu1 %397  ;;  %v224_v14 = vpop.permute.xlu0 %223 }
  0xd4   : > { %v230_v15 = vsel %vm229_vm6, %v224_v14, %v226_v8  ;;  %v403_v16 = vsel %vm229_vm6, %v398_v13, %v400_v11 }
  0xd5   : > { %331 = vmatpush1.msra.mxu0 %v230_v15  ;;  %494 = vmatpush1.msra.mxu1 %v403_v16 }
  0xd7   : > { %v217_v17 = vpop.permute.xlu1 %216  ;;  %v215_v18 = vpop.permute.xlu0 %214 }
  0xd8   : > { %v220_v19 = vsel %vm218_vm7, %v215_v18, %v217_v17 }
  0xd9   : > { %332 = vmatprep.subr.mxu0 %v220_v19 }
  0xdb   : > { %v392_v20 = vpop.permute.xlu1 %391  ;;  %v390_v21 = vpop.permute.xlu0 %389 }
  0xdc   : > { %v394_v22 = vsel %vm218_vm7, %v390_v21, %v392_v20 }
  0xdd   : > { %495 = vmatprep.subr.mxu1 %v394_v22 }
  0xdf   : > { %v388_v23 = vpop.permute.xlu1 %387  ;;  %v213_v24 = vpop.permute.xlu0 %212 }
  0xe0   : > { %v219_v25 = vsel %vm218_vm7, %v213_v24, %v215_v18  ;;  %v393_v26 = vsel %vm218_vm7, %v388_v23, %v390_v21 }
  0xe1   : > { %333 = vmatpush1.msra.mxu0 %v219_v25  ;;  %496 = vmatpush1.msra.mxu1 %v393_v26 }
  0xe2   : > { %334 = vmatprep.subr.mxu0 %v778_v1  ;;  %497 = vmatprep.subr.mxu1 %v776_v0 }
  0xe3   : > { %335 = vmatpush1.msra.mxu0 %v784_v5  ;;  %498 = vmatpush1.msra.mxu1 %v782_v4 }
  0xe4   : > { %661 = vmatmul.mubr.msk.f32.vlgmr.msra.gmra.mxu0 %vm300_vm8, %v205_v27  ;;  %665 = vmatmul.mubr.msk.f32.vlgmr.msra.gmra.mxu1 %vm300_vm8, %v205_v27 }
 0x1a4   : > { %v370_v28 = vpop.f32.mrf.mxu0  ;;  %v533_v29 = vpop.f32.mrf.mxu1 }
 0x1a6   : > { %v372_v30 = vpop.f32.mrf.mxu0  ;;  %v535_v31 = vpop.f32.mrf.mxu1 }
 0x1a7   : > { %v377_v32 = vcombine.low %v370_v28, %v372_v30  ;;  %v540_v33 = vcombine.low %v533_v29, %v535_v31 }
 0x1a9   : > { %379 = vst [vmem:[%s203_s4] sm:$0xff] %v377_v32  ;;  %666 = vst [vmem:[%s203_s4 + $0x8] sm:$0xff] %v540_v33 }
 0x1aa PF: > { %s12_s11 = sadd.s32 1, %s726_s11   ;;  %s840_s9 = smov %s722_s10 }
 0x1ab   : > { %p9_p5 = scmp.ge.s32.totalorder %s12_s11, 5   ;;  %s841_s10 = smov %s843_s12 }
 0x1ad   :  { %11 = sbr.rel (!%p9_p5) target bundleno = 2 (0x2), region = 63 }

</bundles_post_ra>
